<compile_context>
chip_gen: v7x
topology: tpu7x:2x2x1
jax: 0.10.0
libtpu: 0.0.40
codegen_flags: <defaults>
</compile_context>

<pallas_src>
import functools
import math

import jax
import jax.numpy as jnp
from jax import lax
from jax.experimental import pallas as pl
from jax.experimental.pallas import tpu as pltpu


# ---------------------------------------------------------------------------
# helpers
# ---------------------------------------------------------------------------

def _pick_tile(dim, target, aligns):
    """Largest tile <= target dividing dim, preferring coarser alignment."""
    if dim <= target:
        return dim
    for align in aligns:
        t = (target // align) * align
        while t >= align:
            if dim % t == 0:
                return t
            t -= align
    return dim  # fall back to untiled (always legal)


_VMEM_LIMIT = 48 * 1024 * 1024  # fits v7x's 64 MiB physical VMEM with headroom


# ---------------------------------------------------------------------------
# Linear (full-K): out = act(x @ w + b)
# ---------------------------------------------------------------------------

def _linear_kernel(x_ref, w_ref, b_ref, o_ref, *, activation):
    y = jnp.dot(x_ref[...], w_ref[...], preferred_element_type=jnp.float32)
    y = y + b_ref[...]                       # bias kept in f32
    if activation == "gelu":
        # TODO(synk): HF BERT uses exact erf-GELU; tanh-approx GELU used for
        # guaranteed Mosaic lowering.
        y = jax.nn.gelu(y, approximate=True)
    elif activation == "tanh":
        y = jnp.tanh(y)
    o_ref[...] = y.astype(o_ref.dtype)


def pallas_linear(x, w, b, activation="none", out_dtype=jnp.bfloat16):
    """(M, K) @ (K, N) + (1, N) [-> activation].  Full-K, bf16 MXU, f32 math."""
    M, K = x.shape
    N = w.shape[1]
    tm = _pick_tile(M, 512, aligns=(16, 8))
    tn = _pick_tile(N, 768, aligns=(256, 128))
    grid = (M // tm, N // tn)
    n_i, n_j = grid
    out_isize = jnp.dtype(out_dtype).itemsize
    bytes_accessed = int(M * K * x.dtype.itemsize * n_j      # x re-read per j
                         + K * N * w.dtype.itemsize * n_i    # w re-read per i
                         + N * 4 * n_i + M * N * out_isize)
    # TODO(synk): sweep pipeline_mode=pl.Buffered(3) on the weight spec if
    # xprof shows exposed DMA between (i, j) steps (most relevant on v5e).
    return pl.pallas_call(
        functools.partial(_linear_kernel, activation=activation),
        out_shape=jax.ShapeDtypeStruct((M, N), out_dtype),
        grid=grid,
        in_specs=[
            pl.BlockSpec((tm, K), lambda i, j: (i, 0)),
            pl.BlockSpec((K, tn), lambda i, j: (0, j)),
            pl.BlockSpec((1, tn), lambda i, j: (0, j)),
        ],
        out_specs=pl.BlockSpec((tm, tn), lambda i, j: (i, j)),
        compiler_params=pltpu.CompilerParams(
            dimension_semantics=("parallel", "parallel"),
            vmem_limit_bytes=_VMEM_LIMIT),
        cost_estimate=pl.CostEstimate(
            flops=int(2 * M * N * K),
            transcendentals=int(M * N if activation != "none" else 0),
            bytes_accessed=bytes_accessed),
    )(x, w, b)


# ---------------------------------------------------------------------------
# Linear + residual add + LayerNorm fused epilogue: out = LN(x @ w + b + r)
# (full row resident: tn == N == hidden)
# ---------------------------------------------------------------------------

def _linear_add_ln_kernel(x_ref, w_ref, b_ref, r_ref, g_ref, bt_ref, o_ref):
    y = jnp.dot(x_ref[...], w_ref[...], preferred_element_type=jnp.float32)
    y = y + b_ref[...] + r_ref[...].astype(jnp.float32)
    mu = jnp.mean(y, axis=-1, keepdims=True)
    var = jnp.mean(jnp.square(y - mu), axis=-1, keepdims=True)
    y = (y - mu) * lax.rsqrt(var + 1e-12) * g_ref[...] + bt_ref[...]
    o_ref[...] = y.astype(o_ref.dtype)


def pallas_linear_add_layernorm(x, w, b, r, g, bt, out_dtype=jnp.bfloat16):
    """LN((M,K) @ (K,N) + (1,N) + residual(M,N)); N is the full hidden width."""
    M, K = x.shape
    N = w.shape[1]
    tm = _pick_tile(M, 512, aligns=(16, 8))
    grid = (M // tm,)
    bytes_accessed = int(M * K * x.dtype.itemsize
                         + K * N * w.dtype.itemsize
                         + M * N * r.dtype.itemsize
                         + M * N * jnp.dtype(out_dtype).itemsize)
    return pl.pallas_call(
        _linear_add_ln_kernel,
        out_shape=jax.ShapeDtypeStruct((M, N), out_dtype),
        grid=grid,
        in_specs=[
            pl.BlockSpec((tm, K), lambda i: (i, 0)),
            pl.BlockSpec((K, N), lambda i: (0, 0)),
            pl.BlockSpec((1, N), lambda i: (0, 0)),
            pl.BlockSpec((tm, N), lambda i: (i, 0)),
            pl.BlockSpec((1, N), lambda i: (0, 0)),
            pl.BlockSpec((1, N), lambda i: (0, 0)),
        ],
        out_specs=pl.BlockSpec((tm, N), lambda i: (i, 0)),
        compiler_params=pltpu.CompilerParams(
            dimension_semantics=("parallel",),
            vmem_limit_bytes=_VMEM_LIMIT),
        cost_estimate=pl.CostEstimate(
            flops=int(2 * M * N * K),
            transcendentals=0,
            bytes_accessed=bytes_accessed),
    )(x, w, b, r, g, bt)


# ---------------------------------------------------------------------------
# Standalone LayerNorm (embeddings only)
# ---------------------------------------------------------------------------

def _layernorm_kernel(x_ref, g_ref, b_ref, o_ref):
    x = x_ref[...].astype(jnp.float32)
    mu = jnp.mean(x, axis=-1, keepdims=True)
    var = jnp.mean(jnp.square(x - mu), axis=-1, keepdims=True)
    y = (x - mu) * lax.rsqrt(var + 1e-12) * g_ref[...] + b_ref[...]
    o_ref[...] = y.astype(o_ref.dtype)


def pallas_layernorm(x, g, b, out_dtype=jnp.bfloat16):
    M, H = x.shape
    tm = _pick_tile(M, 512, aligns=(16, 8))
    return pl.pallas_call(
        _layernorm_kernel,
        out_shape=jax.ShapeDtypeStruct((M, H), out_dtype),
        grid=(M // tm,),
        in_specs=[
            pl.BlockSpec((tm, H), lambda i: (i, 0)),
            pl.BlockSpec((1, H), lambda i: (0, 0)),
            pl.BlockSpec((1, H), lambda i: (0, 0)),
        ],
        out_specs=pl.BlockSpec((tm, H), lambda i: (i, 0)),
        compiler_params=pltpu.CompilerParams(dimension_semantics=("parallel",)),
    )(x, g, b)


# ---------------------------------------------------------------------------
# Attention: per-batch grid, heads batched inside the kernel, reads the fused
# (B*S, 3H) qkv directly and writes a lane-dense (S, H) context block.
# ---------------------------------------------------------------------------

def _attention_kernel(qkv_ref, bias_ref, o_ref, *, scale, S, H, Hh, Dh):
    # qkv block: (S, 3H) bf16; bias block: (1, 1, S) f32; out block: (S, H).
    bias = bias_ref[0]                                  # (1, S) f32, broadcasts
    # Static per-head loop (Hh is small); all slicing stays in VMEM.
    for h in range(Hh):
        q = qkv_ref[:, h * Dh:(h + 1) * Dh]             # (S, Dh) bf16
        k = qkv_ref[:, H + h * Dh:H + (h + 1) * Dh]
        v = qkv_ref[:, 2 * H + h * Dh:2 * H + (h + 1) * Dh]
        # Contract last dims directly — no explicit k.T transpose.
        s = lax.dot_general(q, k, (((1,), (1,)), ((), ())),
                            preferred_element_type=jnp.float32)
        s = s * scale + bias                             # scale in f32
        m = jnp.max(s, axis=-1, keepdims=True)
        p = jnp.exp(s - m)
        denom = jnp.sum(p, axis=-1, keepdims=True)
        # TODO(synk): approx reciprocal (EUP) — tiny deviation vs exact division.
        p = p * pl.reciprocal(denom, approx=True)
        ctx = lax.dot_general(p.astype(v.dtype), v, (((1,), (0,)), ((), ())),
                              preferred_element_type=jnp.float32)
        o_ref[:, h * Dh:(h + 1) * Dh] = ctx.astype(o_ref.dtype)


def pallas_attention(qkv, bias, scale, *, B, S, H, Hh):
    """qkv: (B*S, 3H) bf16 fused projections; bias: (B, 1, S) f32 additive mask.

    Returns context in (B*S, H) layout, ready for the output projection
    (no head split/merge transposes in XLA).
    """
    # TODO(synk): for long S use a kv grid axis + online-softmax (flash style)
    # instead of materializing the (S, S) score tile per head.
    Dh = H // Hh
    return pl.pallas_call(
        functools.partial(_attention_kernel, scale=scale, S=S, H=H, Hh=Hh, Dh=Dh),
        out_shape=jax.ShapeDtypeStruct((B * S, H), jnp.bfloat16),
        grid=(B,),
        in_specs=[
            pl.BlockSpec((S, 3 * H), lambda b: (b, 0)),
            pl.BlockSpec((1, 1, S), lambda b: (b, 0, 0)),
        ],
        out_specs=pl.BlockSpec((S, H), lambda b: (b, 0)),
        compiler_params=pltpu.CompilerParams(
            dimension_semantics=("parallel",),
            vmem_limit_bytes=_VMEM_LIMIT),
    )(qkv, bias)


# ---------------------------------------------------------------------------
# Parameter init (deterministic, synthetic small BERT; matmul weights in bf16)
# ---------------------------------------------------------------------------

def init_bert_params(key, cfg):
    H, I = cfg["hidden"], cfg["intermediate"]
    L = cfg["num_labels"]
    Lp = ((L + 127) // 128) * 128  # pad classifier output to 128 lanes
    keys = iter(jax.random.split(key, 64))

    def w(shape, dtype=jnp.bfloat16):
        return (jax.random.normal(next(keys), shape, jnp.float32) * 0.02).astype(dtype)

    cls_w_core = jax.random.normal(next(keys), (H, L), jnp.float32) * 0.02
    cls_w = jnp.zeros((H, Lp), jnp.float32).at[:, :L].set(cls_w_core).astype(jnp.bfloat16)

    params = {
        "word_emb": w((cfg["vocab"], H), jnp.float32),
        "pos_emb": w((cfg["max_pos"], H), jnp.float32),
        "type_emb": w((cfg["type_vocab"], H), jnp.float32),
        "emb_ln_g": jnp.ones((1, H), jnp.float32),
        "emb_ln_b": jnp.zeros((1, H), jnp.float32),
        "layers": [],
        "pool_w": w((H, H)),
        "pool_b": jnp.zeros((1, H), jnp.float32),
        "cls_w": cls_w,                                  # (H, Lp) bf16, zero-padded
        "cls_b": jnp.zeros((1, Lp), jnp.float32),
    }
    for _ in range(cfg["layers"]):
        wq, wk, wv = w((H, H)), w((H, H)), w((H, H))
        params["layers"].append({
            "wqkv": jnp.concatenate([wq, wk, wv], axis=1),      # (H, 3H) bf16, fused
            "bqkv": jnp.zeros((1, 3 * H), jnp.float32),
            "wo": w((H, H)), "bo": jnp.zeros((1, H), jnp.float32),
            "ln1_g": jnp.ones((1, H), jnp.float32),
            "ln1_b": jnp.zeros((1, H), jnp.float32),
            "w1": w((H, I)), "b1": jnp.zeros((1, I), jnp.float32),
            "w2": w((I, H)), "b2": jnp.zeros((1, H), jnp.float32),
            "ln2_g": jnp.ones((1, H), jnp.float32),
            "ln2_b": jnp.zeros((1, H), jnp.float32),
        })
    return params


# ---------------------------------------------------------------------------
# Forward pass  ==  BertWrapper.forward(x)  ->  logits
# ---------------------------------------------------------------------------

def bert_wrapper_forward(params, x, cfg):
    B, S, _ = x.shape
    H = cfg["hidden"]
    Hh = cfg["heads"]
    Dh = H // Hh

    input_ids = x[:, :, 0]
    attention_mask = x[:, :, 1].astype(jnp.float32)
    token_type_ids = x[:, :, 2]

    # Embeddings (gather is XLA glue; LayerNorm in Pallas). Dropout = identity (eval).
    emb = (jnp.take(params["word_emb"], input_ids, axis=0)
           + params["pos_emb"][:S][None, :, :]
           + jnp.take(params["type_emb"], token_type_ids, axis=0))
    h = pallas_layernorm(emb.reshape(B * S, H),
                         params["emb_ln_g"], params["emb_ln_b"])        # bf16 (B*S, H)

    # Extended additive attention mask, (B, 1, S) f32.
    bias = ((1.0 - attention_mask) * (-1e9)).reshape(B, 1, S)
    scale = 1.0 / math.sqrt(Dh)

    for lp in params["layers"]:
        # Fused Q/K/V projection: one matmul; stays in (B*S, 3H) layout.
        qkv = pallas_linear(h, lp["wqkv"], lp["bqkv"])                   # (B*S, 3H) bf16
        # Attention reads qkv directly and writes (B*S, H): no XLA transposes.
        ctx = pallas_attention(qkv, bias, scale, B=B, S=S, H=H, Hh=Hh)   # (B*S, H) bf16
        # Output projection with fused residual add + LayerNorm epilogue.
        h = pallas_linear_add_layernorm(ctx, lp["wo"], lp["bo"],
                                        h, lp["ln1_g"], lp["ln1_b"])
        # FFN: GELU matmul, then projection with fused add + LayerNorm epilogue.
        inter = pallas_linear(h, lp["w1"], lp["b1"], activation="gelu")  # (B*S, I)
        h = pallas_linear_add_layernorm(inter, lp["w2"], lp["b2"],
                                        h, lp["ln2_g"], lp["ln2_b"])

    # Pooler (CLS token) + classifier. Pad rows to a multiple of 8; classifier
    # output is already padded to 128 lanes; slice at the very end.
    cls_tokens = h.reshape(B, S, H)[:, 0, :]                             # (B, H) bf16
    Bp = ((B + 7) // 8) * 8
    cls_tokens_p = jnp.zeros((Bp, H), cls_tokens.dtype).at[:B].set(cls_tokens)

    pooled = pallas_linear(cls_tokens_p, params["pool_w"], params["pool_b"],
                           activation="tanh")                            # (Bp, H) bf16
    logits_p = pallas_linear(pooled, params["cls_w"], params["cls_b"],
                             out_dtype=jnp.float32)                      # (Bp, Lp) f32
    return logits_p[:B, :cfg["num_labels"]]


# ---------------------------------------------------------------------------

if __name__ == "__main__":
    cfg = dict(vocab=100, hidden=32, heads=2, layers=2, intermediate=64,
               max_pos=16, type_vocab=2, num_labels=2)
    B, S = 2, 8

    key = jax.random.PRNGKey(0)
    pkey, dkey = jax.random.split(key)
    params = init_bert_params(pkey, cfg)

    input_ids = jax.random.randint(dkey, (B, S), 0, cfg["vocab"], dtype=jnp.int32)
    attention_mask = jnp.ones((B, S), jnp.int32).at[1, 6:].set(0)
    token_type_ids = jnp.zeros((B, S), jnp.int32)
    x = jnp.stack([input_ids, attention_mask, token_type_ids], axis=-1)  # (B, S, 3)

    logits = bert_wrapper_forward(params, x, cfg)
    logits = jax.block_until_ready(logits)
    assert logits.shape == (B, cfg["num_labels"])
    assert logits.dtype == jnp.float32
    print("KERNEL_OK")
</pallas_src>

<mosaic_0001>
module attributes {stable_mosaic.version = 11 : i64} {
  func.func @_layernorm_kernel(%arg0: i32, %arg1: memref<16x32xf32, #tpu.memory_space<vmem>>, %arg2: memref<1x32xf32, #tpu.memory_space<vmem>>, %arg3: memref<1x32xf32, #tpu.memory_space<vmem>>, %arg4: memref<16x32xbf16, #tpu.memory_space<vmem>>) attributes {dimension_semantics = [#tpu.dimension_semantics<parallel>], iteration_bounds = array<i64: 1>, scalar_prefetch = 0 : i64, scratch_operands = 0 : i64, tpu.core_type = #tpu.core_type<tc>, window_params = [{transform_indices = @transform_0, window_bounds = array<i64: 16, 32>}, {pipeline_mode = #tpu.pipeline_mode<synchronous>, transform_indices = @transform_1, window_bounds = array<i64: 1, 32>}, {pipeline_mode = #tpu.pipeline_mode<synchronous>, transform_indices = @transform_2, window_bounds = array<i64: 1, 32>}, {transform_indices = @transform_3, window_bounds = array<i64: 16, 32>}]} {
    %c0 = arith.constant 0 : index
    %c0_0 = arith.constant 0 : index
    %0 = vector.load %arg1[%c0, %c0_0] : memref<16x32xf32, #tpu.memory_space<vmem>>, vector<16x32xf32>
    %cst = arith.constant dense<0.000000e+00> : vector<16xf32>
    %1 = vector.multi_reduction <add>, %0, %cst [1] : vector<16x32xf32> to vector<16xf32>
    %2 = vector.shape_cast %1 : vector<16xf32> to vector<16x1xf32>
    %cst_1 = arith.constant 3.200000e+01 : f32
    %3 = vector.broadcast %cst_1 : f32 to vector<16x1xf32>
    %4 = arith.divf %2, %3 : vector<16x1xf32>
    %5 = vector.broadcast %4 : vector<16x1xf32> to vector<16x32xf32>
    %6 = arith.subf %0, %5 : vector<16x32xf32>
    %7 = arith.mulf %6, %6 : vector<16x32xf32>
    %cst_2 = arith.constant dense<0.000000e+00> : vector<16xf32>
    %8 = vector.multi_reduction <add>, %7, %cst_2 [1] : vector<16x32xf32> to vector<16xf32>
    %9 = vector.shape_cast %8 : vector<16xf32> to vector<16x1xf32>
    %cst_3 = arith.constant 3.200000e+01 : f32
    %10 = vector.broadcast %cst_3 : f32 to vector<16x1xf32>
    %11 = arith.divf %9, %10 : vector<16x1xf32>
    %12 = vector.broadcast %4 : vector<16x1xf32> to vector<16x32xf32>
    %13 = arith.subf %0, %12 : vector<16x32xf32>
    %cst_4 = arith.constant 9.99999996E-13 : f32
    %14 = vector.broadcast %cst_4 : f32 to vector<16x1xf32>
    %15 = arith.addf %11, %14 : vector<16x1xf32>
    %16 = math.rsqrt %15 : vector<16x1xf32>
    %17 = vector.broadcast %16 : vector<16x1xf32> to vector<16x32xf32>
    %18 = arith.mulf %13, %17 : vector<16x32xf32>
    %c0_5 = arith.constant 0 : index
    %c0_6 = arith.constant 0 : index
    %19 = vector.load %arg2[%c0_5, %c0_6] : memref<1x32xf32, #tpu.memory_space<vmem>>, vector<1x32xf32>
    %20 = vector.broadcast %19 : vector<1x32xf32> to vector<16x32xf32>
    %21 = arith.mulf %18, %20 : vector<16x32xf32>
    %c0_7 = arith.constant 0 : index
    %c0_8 = arith.constant 0 : index
    %22 = vector.load %arg3[%c0_7, %c0_8] : memref<1x32xf32, #tpu.memory_space<vmem>>, vector<1x32xf32>
    %23 = vector.broadcast %22 : vector<1x32xf32> to vector<16x32xf32>
    %24 = arith.addf %21, %23 : vector<16x32xf32>
    %25 = arith.truncf %24 : vector<16x32xf32> to vector<16x32xbf16>
    %c0_9 = arith.constant 0 : index
    %c0_10 = arith.constant 0 : index
    %26 = vector.load %arg4[%c0_9, %c0_10] : memref<16x32xbf16, #tpu.memory_space<vmem>>, vector<16x32xbf16>
    tpu.vector_store %arg4[%c0_9, %c0_10], %25 {strides = array<i32>} : memref<16x32xbf16, #tpu.memory_space<vmem>>, vector<16x32xbf16>,
    return
  }
  func.func @transform_0(%arg0: i32) -> (i32, i32) {
    %c0_i32 = arith.constant 0 : i32
    %c0_i32_0 = arith.constant 0 : i32
    return %arg0, %c0_i32 : i32, i32
  }
  func.func @transform_1(%arg0: i32) -> (i32, i32) {
    %c0_i32 = arith.constant 0 : i32
    %c0_i32_0 = arith.constant 0 : i32
    %c0_i32_1 = arith.constant 0 : i32
    return %c0_i32, %c0_i32_0 : i32, i32
  }
  func.func @transform_2(%arg0: i32) -> (i32, i32) {
    %c0_i32 = arith.constant 0 : i32
    %c0_i32_0 = arith.constant 0 : i32
    %c0_i32_1 = arith.constant 0 : i32
    return %c0_i32, %c0_i32_0 : i32, i32
  }
  func.func @transform_3(%arg0: i32) -> (i32, i32) {
    %c0_i32 = arith.constant 0 : i32
    %c0_i32_0 = arith.constant 0 : i32
    return %arg0, %c0_i32 : i32, i32
  }
}

</mosaic_0001>

<bundles_post_ra>
// kernel: tpu_custom_call.1
= control target key start
LH: loop header
LB: loop body
LE: loop exit
PB: predicated region body
PF: predicated region fallthrough
CT: control target
= control target key end

     0   :  { %8 = vsyncpa [#allocation3], 0  ;;  %s229_s0 = inlined_call_operand.hbm [shape: f32[16,32], index: 0, kind: input, shape index: {}]   ;;  %s230_s1 = inlined_call_operand.vmem [shape: f32[1,32], index: 1, kind: input, shape index: {}]   ;;  %s231_s2 = inlined_call_operand.vmem [shape: f32[1,32], index: 2, kind: input, shape index: {}]   ;;  %s232_s3 = inlined_call_operand.hbm [shape: bf16[16,32], index: 3, kind: output, shape index: {}]  }
   0x1   :  { %9 = vsyncpa [#allocation4], 0  ;;  %s169_s12 = smov [#allocation2]   ;;  %s121_s16 = scalar_lea.hbm %s229_s0, 256 }
   0x2   :  { %s15_s13 = sshll.u32 %s169_s12, 4  ;;  %p122_p0 = scmp.ne.s32.totalorder %s229_s0, %s121_s16  ;;  %s16_s13 = int_to_ptr.vmem [resolvable:$true] %s15_s13 }
   0x3   :  { %p125_p1 = scmp.lt.u32.totalorder %s121_s16, %s229_s0 }
   0x5   :  { %p127_p2 = pnand %p125_p1, %p122_p0 }
   0x7   :  { %130 = shalt.err (!%p127_p2)
}
   0x8   :  { %s131_s21 = scalar_lea.vmem %s16_s13, 256  ;;  %p136_p4 = scmp.lt.s32.totalorder %s16_s13, %s16_s13 }
   0x9   :  { %p132_p3 = scmp.ne.s32.totalorder %s16_s13, %s131_s21  ;;  %p137_p5 = scmp.lt.s32.totalorder %s131_s21, %s131_s21 }
   0xb   :  { %p138_p6 = por %p137_p5, %p136_p4 }
   0xd   :  { %p139_p7 = pnand %p138_p6, %p132_p3 }
   0xf   :  { %142 = shalt.err (!%p139_p7)
}
  0x10   :  { %s170_s22 = smov 128   ;;  %s171_s23 = smov 8  }
  0x11   :  { %21 = dma.hbm_to_vmem [thread:$0]  %s229_s0, 256, %s16_s13, [#allocation3], %s170_s22, %s170_s22, %s171_s23  }
  0x12   :  { %165 = dma.done.wait [#allocation3], 256  }
  0x13   :  { %166 = vsyncadd [#allocation3], 4294967040  ;;  %vm31_vm0 = vcmask 261120   ;;  %v29_v0 = vld [vmem:[#allocation2] sm:$0xff]  ;;  %v30_v1 = vld [vmem:[#allocation2 + $0x8] sm:$0xff]  ;;  %vm85_vm1 = vcmask 257024  }
  0x14   :  { %v32_v2 = vsel %vm31_vm0, %v29_v0, 0.0  ;;  %v35_v3 = vsel %vm31_vm0, %v30_v1, 0.0  ;;  %v105_v21 = vld [vmem:[%s230_s1] ss:$0 sm:$0xff]  ;;  %s172_s29 = smov [#allocation5]  }
  0x15   :  { %33 = vadd.xlane.f32.xlu0 %v32_v2  ;;  %v106_v23 = vld [vmem:[%s231_s2] ss:$0 sm:$0xff]  ;;  %s93_s30 = sshll.u32 %s172_s29, 4  ;;  %s94_s30 = int_to_ptr.vmem [resolvable:$true] %s93_s30 }
  0x16   :  { %s143_s1 = scalar_lea.vmem %s94_s30, 128  ;;  %p148_p9 = scmp.lt.s32.totalorder %s94_s30, %s94_s30 }
  0x17   :  { %p144_p8 = scmp.ne.s32.totalorder %s94_s30, %s143_s1  ;;  %p149_p10 = scmp.lt.s32.totalorder %s143_s1, %s143_s1 }
  0x19   :  { %36 = vadd.xlane.f32.xlu0 %v35_v3  ;;  %p150_p11 = por %p149_p10, %p148_p9 }
  0x1b   :  { %p151_p12 = pnand %p150_p11, %p144_p8 }
  0xa2   :  { %v34_v4 = vpop.xlane.xlu0 %33 }
  0xa3   :  { %v39_v5 = vmul.f32 0.03125, %v34_v4 }
  0xa5   :  { %v41_v6 = vsub.f32 %v29_v0, %v39_v5 }
  0xa6   :  { %v37_v7 = vpop.xlane.xlu0 %36 }
  0xa7   :  { %v40_v8 = vmul.f32 0.03125, %v37_v7  ;;  %v43_v9 = vmul.f32 %v41_v6, %v41_v6 }
  0xa9   :  { %v42_v10 = vsub.f32 %v30_v1, %v40_v8  ;;  %v45_v11 = vsel %vm31_vm0, %v43_v9, 0.0 }
  0xaa   :  { %46 = vadd.xlane.f32.xlu1 %v45_v11 }
  0xab   :  { %v44_v12 = vmul.f32 %v42_v10, %v42_v10 }
  0xad   :  { %v48_v13 = vsel %vm31_vm0, %v44_v12, 0.0 }
  0xae   :  { %49 = vadd.xlane.f32.xlu1 %v48_v13 }
 0x137   :  { %v47_v14 = vpop.xlane.xlu1 %46 }
 0x138   :  { %v51_v15 = vmul.f32 0.03125, %v47_v14 }
 0x13a   :  { %v53_v16 = vadd.f32 1e-12, %v51_v15 }
 0x13b   :  { %v50_v17 = vpop.xlane.xlu1 %49 }
 0x13c   :  { %117 = vrsqrt.f32 %v53_v16  ;;  %v52_v18 = vmul.f32 0.03125, %v50_v17 }
 0x13e   :  { %v54_v19 = vadd.f32 1e-12, %v52_v18 }
 0x140   :  { %119 = vrsqrt.f32 %v54_v19 }
 0x146   :  { %v118_v20 = vpop.eup %117 }
 0x147   :  { %v57_v22 = vmul.f32 %v118_v20, %v41_v6 }
 0x149   :  { %v66_v24 = vmul.f32 %v105_v21, %v57_v22 }
 0x14a   :  { %v120_v25 = vpop.eup %119 }
 0x14b   :  { %v58_v26 = vmul.f32 %v120_v25, %v42_v10  ;;  %v75_v27 = vadd.f32 %v106_v23, %v66_v24 }
 0x14d   :  { %v67_v28 = vmul.f32 %v105_v21, %v58_v26  ;;  %v109_v29 = vpack.c.bf16 %v75_v27, %v75_v27 }
 0x14f   :  { %v76_v30 = vadd.f32 %v106_v23, %v67_v28  ;;  %86 = vst.msk [vmem:[#allocation5] sm:$0xf] %vm85_vm1, %v109_v29 }
 0x151   :  { %v110_v31 = vpack.c.bf16 %v76_v30, %v76_v30 }
 0x153   :  { %87 = vst.msk [vmem:[#allocation5 + $0x4] sm:$0xf] %vm85_vm1, %v110_v31 }
 0x154   :  { %154 = shalt.err (!%p151_p12)
}
 0x155   :  { %s155_s5 = scalar_lea.hbm %s232_s3, 128 }
 0x156   :  { %p156_p13 = scmp.ne.s32.totalorder %s232_s3, %s155_s5  ;;  %p159_p0 = scmp.lt.u32.totalorder %s155_s5, %s232_s3 }
 0x158   :  { %p161_p1 = pnand %p159_p0, %p156_p13 }
 0x15a   :  { %164 = shalt.err (!%p161_p1)
}
 0x15b   :  { %s173_s10 = smov 64   ;;  %s174_s11 = smov 4  }
 0x15c   :  { %99 = dma.vmem_to_hbm [thread:$0]  %s94_s30, 128, %s232_s3, [#allocation4], %s173_s10, %s173_s10, %s174_s11  }
 0x15d   :  { %167 = dma.done.wait [#allocation4], 128  }
 0x15e   :  { %168 = vsyncadd [#allocation4], 4294967168 }
 0x15f   :  { %103 = vsyncpa [#allocation3], 1 }
 0x160   :  { %104 = vsyncpa [#allocation4], 1 }

</bundles_post_ra>
